<compile_context>
chip_gen: v7x
topology: tpu7x:2x2x1
jax: 0.10.0
libtpu: 0.0.40
codegen_flags: <defaults>
</compile_context>

<pallas_src>
import functools

import jax
import jax.numpy as jnp
from jax.experimental import pallas as pl
from jax.experimental.pallas import tpu as pltpu

_EPS = 1e-6  # matches torch.nn.functional.pairwise_distance default eps


def _contrastive_kernel(o1_ref, o2_ref, lab_ref, out_ref, acc_ref,
                        *, margin, batch, tile_b, n_inner):
    o = pl.program_id(0)   # parallel batch chunk (megacore-shardable on v7x)
    k = pl.program_id(1)   # reduction over batch tiles within the chunk

    @pl.when(k == 0)
    def _():
        acc_ref[...] = jnp.zeros_like(acc_ref)

    tile_idx = o * n_inner + k
    row0 = pl.multiple_of(tile_idx * tile_b, tile_b)

    # per-row squared Euclidean distance (torch adds eps to the difference)
    diff = o1_ref[...].astype(jnp.float32) - o2_ref[...].astype(jnp.float32) + _EPS
    sq_sum = jnp.sum(diff * diff, axis=-1, keepdims=True)          # (tile_b, 1)
    dist = jnp.sqrt(sq_sum)                                        # (tile_b, 1)
    hinge = jnp.maximum(margin - dist, 0.0)

    # labels live in VMEM for the whole kernel; slice the rows of this tile
    lab = lab_ref[pl.ds(row0, tile_b), :].astype(jnp.float32)      # (tile_b, 1)

    # positive term uses sq_sum directly (== dist**2, one fewer mul / rounding)
    per_row = lab * sq_sum + (1.0 - lab) * (hinge * hinge)         # (tile_b, 1)

    # zero contribution from rows that are only batch padding
    rows = row0 + jax.lax.broadcasted_iota(jnp.int32, (tile_b, 1), 0)
    per_row = jnp.where(rows < batch, per_row, 0.0)

    acc_ref[...] += jnp.sum(per_row, axis=0, keepdims=True)        # (1, 1)

    @pl.when(k == n_inner - 1)
    def _():
        out_ref[...] = acc_ref[...].reshape(out_ref.shape)         # (1, 1, 1) partial sum


def contrastive_loss(output1, output2, labels, *, margin=1.0, tile_b=None):
    B, D = output1.shape
    labels = jnp.asarray(labels).reshape(B, 1)
    feat_itemsize = jnp.dtype(output1.dtype).itemsize
    lab_itemsize = jnp.dtype(labels.dtype).itemsize

    # ---- tile sizing: big HBM-streaming tiles (~8 MiB per input block) -------
    lane_d = max(128, pl.cdiv(D, 128) * 128)        # lane-padded feature width in VMEM
    if tile_b is None:
        target_block_bytes = 8 * 1024 * 1024        # 2 inputs x 2 bufs -> ~32 MiB total
        tile_b = target_block_bytes // (lane_d * feat_itemsize)
        tile_b = int(max(8, min(tile_b, 8192)))
    tile_b = max(8, (int(tile_b) // 8) * 8)
    tile_b = min(tile_b, pl.cdiv(B, 8) * 8)         # never larger than (padded) batch

    # ---- grid: (parallel chunks) x (reduction tiles) --------------------------
    n_tiles = pl.cdiv(B, tile_b)
    n_outer = 2 if n_tiles >= 2 else 1              # v7x: split batch over 2 TensorCores
    n_inner = pl.cdiv(n_tiles, n_outer)
    b_pad = n_outer * n_inner * tile_b

    if b_pad != B:
        pad = b_pad - B
        output1 = jnp.pad(output1, ((0, pad), (0, 0)))
        output2 = jnp.pad(output2, ((0, pad), (0, 0)))
        labels = jnp.pad(labels, ((0, pad), (0, 0)))

    # ---- explicit VMEM budget: double-buffered feature blocks + resident labels
    feat_bytes = 2 * 2 * tile_b * lane_d * feat_itemsize
    label_bytes = 2 * (pl.cdiv(b_pad, 8) * 8) * 128 * lab_itemsize
    vmem_limit = feat_bytes + label_bytes + (2 << 20)
    vmem_limit = int(min(max(vmem_limit, 16 << 20), 56 << 20))

    kernel = functools.partial(_contrastive_kernel, margin=float(margin),
                               batch=B, tile_b=tile_b, n_inner=n_inner)

    partials = pl.pallas_call(
        kernel,
        out_shape=jax.ShapeDtypeStruct((n_outer, 1, 1), jnp.float32),
        grid_spec=pltpu.PrefetchScalarGridSpec(
            num_scalar_prefetch=0,
            grid=(n_outer, n_inner),
            in_specs=[
                pl.BlockSpec((tile_b, D), lambda o, k: (o * n_inner + k, 0)),
                pl.BlockSpec((tile_b, D), lambda o, k: (o * n_inner + k, 0)),
                # labels: one full resident VMEM block, no per-step DMA
                pl.BlockSpec((b_pad, 1), lambda o, k: (0, 0)),
            ],
            out_specs=pl.BlockSpec((1, 1, 1), lambda o, k: (o, 0, 0)),
            scratch_shapes=[pltpu.VMEM((1, 1), jnp.float32)],
        ),
        compiler_params=pltpu.CompilerParams(
            dimension_semantics=("parallel", "arbitrary"),
            vmem_limit_bytes=vmem_limit,
        ),
    )(output1, output2, labels)

    # per-chunk partial sums -> mean over the true batch
    return jnp.sum(partials) / jnp.float32(B)


def _reference_loss(output1, output2, labels, margin=1.0):
    diff = output1 - output2 + _EPS
    dist = jnp.sqrt(jnp.sum(diff * diff, axis=-1, keepdims=True))
    hinge = jnp.maximum(margin - dist, 0.0)
    lab = labels.reshape(-1, 1)
    return jnp.mean(lab * dist**2 + (1.0 - lab) * hinge**2)


if __name__ == "__main__":
    key = jax.random.PRNGKey(0)

    def run_case(B, D, tile_b=None, margin=1.0, seed_offset=0):
        k1, k2, k3 = jax.random.split(jax.random.fold_in(key, seed_offset), 3)
        o1 = jax.random.normal(k1, (B, D), dtype=jnp.float32)
        o2 = jax.random.normal(k2, (B, D), dtype=jnp.float32)
        lab = (jax.random.uniform(k3, (B, 1)) < 0.5).astype(jnp.float32)

        got = contrastive_loss(o1, o2, lab, margin=margin, tile_b=tile_b)
        got = jax.block_until_ready(got)
        ref = _reference_loss(o1, o2, lab, margin=margin)
        assert jnp.allclose(got, ref, rtol=1e-5, atol=1e-5), (B, D, tile_b, got, ref)

    run_case(16, 32)                               # single tile, auto tile size
    run_case(16, 32, tile_b=8, seed_offset=1)      # 2 parallel chunks x 1 reduction tile
    run_case(20, 40, tile_b=8, seed_offset=2)      # padded batch + masked tail rows
    print("KERNEL_OK")
</pallas_src>

<mosaic_0001>
module attributes {stable_mosaic.version = 11 : i64} {
  func.func @_contrastive_kernel(%arg0: i32, %arg1: i32, %arg2: memref<16x32xf32, #tpu.memory_space<vmem>>, %arg3: memref<16x32xf32, #tpu.memory_space<vmem>>, %arg4: memref<16x1xf32, #tpu.memory_space<vmem>>, %arg5: memref<1x1x1xf32, #tpu.memory_space<vmem>>, %arg6: memref<1x1xf32, #tpu.memory_space<vmem>>) attributes {dimension_semantics = [#tpu.dimension_semantics<parallel>, #tpu.dimension_semantics<arbitrary>], iteration_bounds = array<i64: 1, 1>, scalar_prefetch = 0 : i64, scratch_operands = 1 : i64, tpu.core_type = #tpu.core_type<tc>, window_params = [{transform_indices = @transform_0, window_bounds = array<i64: 16, 32>}, {transform_indices = @transform_1, window_bounds = array<i64: 16, 32>}, {pipeline_mode = #tpu.pipeline_mode<synchronous>, transform_indices = @transform_2, window_bounds = array<i64: 16, 1>}, {transform_indices = @transform_3, window_bounds = array<i64: 1, 1, 1>}]} {
    %c0_i32 = arith.constant 0 : i32
    %0 = arith.cmpi eq, %arg1, %c0_i32 : i32
    %1 = arith.extui %0 : i1 to i32
    %c0_i32_0 = arith.constant 0 : i32
    %2 = arith.cmpi ne, %1, %c0_i32_0 : i32
    scf.if %2 {
      %cst_18 = arith.constant 0.000000e+00 : f32
      %43 = vector.broadcast %cst_18 : f32 to vector<1x1xf32>
      %c0_19 = arith.constant 0 : index
      %c0_20 = arith.constant 0 : index
      %44 = vector.load %arg6[%c0_19, %c0_20] : memref<1x1xf32, #tpu.memory_space<vmem>>, vector<1x1xf32>
      tpu.vector_store %arg6[%c0_19, %c0_20], %43 {strides = array<i32>} : memref<1x1xf32, #tpu.memory_space<vmem>>, vector<1x1xf32>,
    } else {
    }
    %c1_i32 = arith.constant 1 : i32
    %3 = arith.muli %arg0, %c1_i32 : i32
    %4 = arith.addi %3, %arg1 : i32
    %c16_i32 = arith.constant 16 : i32
    %5 = arith.muli %4, %c16_i32 : i32
    %6 = tpu.assume_multiple %5, 16 : i32
    %c0 = arith.constant 0 : index
    %c0_1 = arith.constant 0 : index
    %7 = vector.load %arg2[%c0, %c0_1] : memref<16x32xf32, #tpu.memory_space<vmem>>, vector<16x32xf32>
    %c0_2 = arith.constant 0 : index
    %c0_3 = arith.constant 0 : index
    %8 = vector.load %arg3[%c0_2, %c0_3] : memref<16x32xf32, #tpu.memory_space<vmem>>, vector<16x32xf32>
    %9 = arith.subf %7, %8 : vector<16x32xf32>
    %cst = arith.constant 9.99999997E-7 : f32
    %10 = vector.broadcast %cst : f32 to vector<16x32xf32>
    %11 = arith.addf %9, %10 : vector<16x32xf32>
    %12 = arith.mulf %11, %11 : vector<16x32xf32>
    %cst_4 = arith.constant dense<0.000000e+00> : vector<16xf32>
    %13 = vector.multi_reduction <add>, %12, %cst_4 [1] : vector<16x32xf32> to vector<16xf32>
    %14 = vector.shape_cast %13 : vector<16xf32> to vector<16x1xf32>
    %15 = math.sqrt %14 : vector<16x1xf32>
    %cst_5 = arith.constant 1.000000e+00 : f32
    %16 = vector.broadcast %cst_5 : f32 to vector<16x1xf32>
    %17 = arith.subf %16, %15 : vector<16x1xf32>
    %cst_6 = arith.constant 0.000000e+00 : f32
    %18 = vector.broadcast %cst_6 : f32 to vector<16x1xf32>
    %19 = arith.maximumf %17, %18 : vector<16x1xf32>
    %20 = arith.index_cast %6 : i32 to index
    %c0_7 = arith.constant 0 : index
    %21 = vector.load %arg4[%20, %c0_7] : memref<16x1xf32, #tpu.memory_space<vmem>>, vector<16x1xf32>
    %22 = arith.mulf %21, %14 : vector<16x1xf32>
    %cst_8 = arith.constant 1.000000e+00 : f32
    %23 = vector.broadcast %cst_8 : f32 to vector<16x1xf32>
    %24 = arith.subf %23, %21 : vector<16x1xf32>
    %25 = arith.mulf %19, %19 : vector<16x1xf32>
    %26 = arith.mulf %24, %25 : vector<16x1xf32>
    %27 = arith.addf %22, %26 : vector<16x1xf32>
    %28 = tpu.iota {dimensions = array<i32: 0>} : vector<16x1xi32>
    %29 = vector.broadcast %6 : i32 to vector<16x1xi32>
    %30 = arith.addi %29, %28 : vector<16x1xi32>
    %c16_i32_9 = arith.constant 16 : i32
    %31 = vector.broadcast %c16_i32_9 : i32 to vector<16x1xi32>
    %32 = arith.cmpi slt, %30, %31 : vector<16x1xi32>
    %cst_10 = arith.constant 0.000000e+00 : f32
    %33 = vector.broadcast %cst_10 : f32 to vector<16x1xf32>
    %34 = arith.select %32, %27, %33 : vector<16x1xi1>, vector<16x1xf32>
    %c0_11 = arith.constant 0 : index
    %c0_12 = arith.constant 0 : index
    %35 = vector.load %arg6[%c0_11, %c0_12] : memref<1x1xf32, #tpu.memory_space<vmem>>, vector<1x1xf32>
    %cst_13 = arith.constant dense<0.000000e+00> : vector<1xf32>
    %36 = vector.multi_reduction <add>, %34, %cst_13 [0] : vector<16x1xf32> to vector<1xf32>
    %37 = vector.shape_cast %36 : vector<1xf32> to vector<1x1xf32>
    %38 = arith.addf %35, %37 : vector<1x1xf32>
    %c0_14 = arith.constant 0 : index
    %c0_15 = arith.constant 0 : index
    %39 = vector.load %arg6[%c0_14, %c0_15] : memref<1x1xf32, #tpu.memory_space<vmem>>, vector<1x1xf32>
    tpu.vector_store %arg6[%c0_14, %c0_15], %38 {strides = array<i32>} : memref<1x1xf32, #tpu.memory_space<vmem>>, vector<1x1xf32>,
    %c0_i32_16 = arith.constant 0 : i32
    %40 = arith.cmpi eq, %arg1, %c0_i32_16 : i32
    %41 = arith.extui %40 : i1 to i32
    %c0_i32_17 = arith.constant 0 : i32
    %42 = arith.cmpi ne, %41, %c0_i32_17 : i32
    scf.if %42 {
      %c0_18 = arith.constant 0 : index
      %c0_19 = arith.constant 0 : index
      %43 = vector.load %arg6[%c0_18, %c0_19] : memref<1x1xf32, #tpu.memory_space<vmem>>, vector<1x1xf32>
      %44 = vector.shape_cast %43 : vector<1x1xf32> to vector<1x1x1xf32>
      %c0_20 = arith.constant 0 : index
      %c0_21 = arith.constant 0 : index
      %c0_22 = arith.constant 0 : index
      %45 = vector.load %arg5[%c0_20, %c0_21, %c0_22] : memref<1x1x1xf32, #tpu.memory_space<vmem>>, vector<1x1x1xf32>
      tpu.vector_store %arg5[%c0_20, %c0_21, %c0_22], %44 {strides = array<i32>} : memref<1x1x1xf32, #tpu.memory_space<vmem>>, vector<1x1x1xf32>,
    } else {
    }
    return
  }
  func.func @transform_0(%arg0: i32, %arg1: i32) -> (i32, i32) {
    %c1_i32 = arith.constant 1 : i32
    %0 = arith.muli %arg0, %c1_i32 : i32
    %1 = arith.addi %0, %arg1 : i32
    %c0_i32 = arith.constant 0 : i32
    %c0_i32_0 = arith.constant 0 : i32
    return %1, %c0_i32 : i32, i32
  }
  func.func @transform_1(%arg0: i32, %arg1: i32) -> (i32, i32) {
    %c1_i32 = arith.constant 1 : i32
    %0 = arith.muli %arg0, %c1_i32 : i32
    %1 = arith.addi %0, %arg1 : i32
    %c0_i32 = arith.constant 0 : i32
    %c0_i32_0 = arith.constant 0 : i32
    return %1, %c0_i32 : i32, i32
  }
  func.func @transform_2(%arg0: i32, %arg1: i32) -> (i32, i32) {
    %c0_i32 = arith.constant 0 : i32
    %c0_i32_0 = arith.constant 0 : i32
    %c0_i32_1 = arith.constant 0 : i32
    return %c0_i32, %c0_i32_0 : i32, i32
  }
  func.func @transform_3(%arg0: i32, %arg1: i32) -> (i32, i32, i32) {
    %c0_i32 = arith.constant 0 : i32
    %c0_i32_0 = arith.constant 0 : i32
    %c0_i32_1 = arith.constant 0 : i32
    return %arg0, %c0_i32, %c0_i32_0 : i32, i32, i32
  }
}

</mosaic_0001>

<bundles_post_ra>
// kernel: tpu_custom_call.1
= control target key start
LH: loop header
LB: loop body
LE: loop exit
PB: predicated region body
PF: predicated region fallthrough
CT: control target
= control target key end

     0   :  { %8 = vsyncpa [#allocation4], 0  ;;  %s284_s0 = inlined_call_operand.vmem [shape: f32[16,32], index: 0, kind: input, shape index: {}]   ;;  %s285_s1 = inlined_call_operand.hbm [shape: f32[16,32], index: 1, kind: input, shape index: {}]   ;;  %s286_s2 = inlined_call_operand.vmem [shape: f32[16,1], index: 2, kind: input, shape index: {}]   ;;  %s287_s3 = inlined_call_operand.hbm [shape: f32[1,1,1], index: 3, kind: output, shape index: {}]  }
   0x1   :  { %9 = vsyncpa [#allocation5], 0  ;;  %s220_s12 = smov [#allocation3]   ;;  %s172_s16 = scalar_lea.hbm %s285_s1, 256 }
   0x2   :  { %s29_s13 = sshll.u32 %s220_s12, 4  ;;  %p173_p0 = scmp.ne.s32.totalorder %s285_s1, %s172_s16  ;;  %s30_s13 = int_to_ptr.vmem [resolvable:$true] %s29_s13 }
   0x3   :  { %p176_p1 = scmp.lt.u32.totalorder %s172_s16, %s285_s1 }
   0x5   :  { %p178_p2 = pnand %p176_p1, %p173_p0 }
   0x7   :  { %181 = shalt.err (!%p178_p2)
}
   0x8   :  { %s182_s21 = scalar_lea.vmem %s30_s13, 256  ;;  %p187_p4 = scmp.lt.s32.totalorder %s30_s13, %s30_s13 }
   0x9   :  { %p183_p3 = scmp.ne.s32.totalorder %s30_s13, %s182_s21  ;;  %p188_p5 = scmp.lt.s32.totalorder %s182_s21, %s182_s21 }
   0xb   :  { %p189_p6 = por %p188_p5, %p187_p4 }
   0xd   :  { %p190_p7 = pnand %p189_p6, %p183_p3 }
   0xf   :  { %193 = shalt.err (!%p190_p7)
}
  0x10   :  { %s221_s22 = smov 128   ;;  %s222_s23 = smov 8  }
  0x11   :  { %35 = dma.hbm_to_vmem [thread:$0]  %s285_s1, 256, %s30_s13, [#allocation4], %s221_s22, %s221_s22, %s222_s23  }
  0x12   :  { %216 = dma.done.wait [#allocation4], 256  }
  0x13   :  { %217 = vsyncadd [#allocation4], 4294967040  ;;  %v65_v0 = vld [vmem:[%s284_s0] sm:$0xff]  ;;  %v66_v2 = vld [vmem:[%s284_s0 + $0x8] sm:$0xff]  ;;  %vm75_vm0 = vcmask 261120   ;;  %vm61_vm1 = vcmask 0  }
  0x14   :  { %v67_v1 = vld [vmem:[#allocation3] sm:$0xff]  ;;  %v68_v4 = vld [vmem:[#allocation3 + $0x8] sm:$0xff]  ;;  %v223_v12 = vmov 0.0   ;;  %vm124_vm6 = vcmask 7168  }
  0x15   :  { %v69_v3 = vsub.f32 %v65_v0, %v67_v1  ;;  %v70_v5 = vsub.f32 %v66_v2, %v68_v4  ;;  %62 = vst.msk [vmem:[#allocation2] sm:$0x1] %vm61_vm1, %v223_v12  ;;  %v101_v23 = vld [vmem:[%s286_s2] sm:$0xff]  ;;  %v102_v31 = vld [vmem:[%s286_s2 + $0x8] sm:$0xff]  ;;  %s224_s2 = smov [#allocation6]  }
  0x16   :  { %v105_v25 = vsub.f32 1.0, %v101_v23  ;;  %v106_v33 = vsub.f32 1.0, %v102_v31  ;;  %s148_s5 = sshll.u32 %s224_s2, 4  ;;  %s149_s5 = int_to_ptr.vmem [resolvable:$true] %s148_s5 }
  0x17   :  { %v71_v6 = vadd.f32 1e-06, %v69_v3  ;;  %v72_v7 = vadd.f32 1e-06, %v70_v5  ;;  %s194_s6 = scalar_lea.vmem %s149_s5, 16  ;;  %s198_s7 = scalar_lea.vmem %s149_s5, 32 }
  0x18   :  { %p195_p8 = scmp.ne.s32.totalorder %s149_s5, %s194_s6  ;;  %p199_p9 = scmp.lt.s32.totalorder %s149_s5, %s149_s5 }
  0x19   :  { %v73_v8 = vmul.f32 %v71_v6, %v71_v6  ;;  %v74_v9 = vmul.f32 %v72_v7, %v72_v7  ;;  %p200_p10 = scmp.lt.s32.totalorder %s198_s7, %s194_s6 }
  0x1b   :  { %v76_v10 = vsel %vm75_vm0, %v73_v8, 0.0  ;;  %v79_v11 = vsel %vm75_vm0, %v74_v9, 0.0  ;;  %p201_p11 = por %p200_p10, %p199_p9 }
  0x1c   :  { %77 = vadd.xlane.f32.xlu0 %v76_v10  ;;  %v123_v49 = vld [vmem:[#allocation2] sm:$0x1] }
  0x1d   :  { %p202_p12 = pnand %p201_p11, %p195_p8 }
  0x20   :  { %80 = vadd.xlane.f32.xlu0 %v79_v11 }
  0xa9   :  { %v78_v13 = vpop.xlane.xlu0 %77 }
  0xaa   :  { %168 = vrsqrt.f32 %v78_v13  ;;  %vm84_vm2 = vcmp.eq.f32.partialorder %v78_v13, inf  ;;  %v87_v17 = vand.u32 2147483648, %v78_v13  ;;  %vm86_vm3 = vcmp.eq.f32.partialorder %v78_v13, 0.0 }
  0xab   :  { %v103_v35 = vmul.f32 %v101_v23, %v78_v13 }
  0xad   :  { %v81_v14 = vpop.xlane.xlu0 %80 }
  0xae   :  { %170 = vrsqrt.f32 %v81_v14  ;;  %vm91_vm4 = vcmp.eq.f32.partialorder %v81_v14, inf  ;;  %v94_v24 = vand.u32 2147483648, %v81_v14  ;;  %vm93_vm5 = vcmp.eq.f32.partialorder %v81_v14, 0.0 }
  0xaf   :  { %v104_v38 = vmul.f32 %v102_v31, %v81_v14 }
  0xb4   :  { %v169_v15 = vpop.eup %168 }
  0xb5   :  { %v83_v16 = vmul.f32 %v169_v15, %v78_v13 }
  0xb7   :  { %v85_v18 = vsel %vm84_vm2, %v78_v13, %v83_v16 }
  0xb8   :  { %v171_v19 = vpop.eup %170  ;;  %v88_v20 = vsel %vm86_vm3, %v87_v17, %v85_v18 }
  0xb9   :  { %v96_v21 = vsub.f32 1.0, %v88_v20  ;;  %v90_v22 = vmul.f32 %v171_v19, %v81_v14 }
  0xbb   :  { %v98_v26 = vmax.f32 %v96_v21, 0.0  ;;  %v92_v27 = vsel %vm91_vm4, %v81_v14, %v90_v22 }
  0xbc   :  { %v95_v28 = vsel %vm93_vm5, %v94_v24, %v92_v27 }
  0xbd   :  { %v107_v29 = vmul.f32 %v98_v26, %v98_v26  ;;  %v97_v30 = vsub.f32 1.0, %v95_v28 }
  0xbf   :  { %v109_v32 = vmul.f32 %v107_v29, %v105_v25  ;;  %v99_v34 = vmax.f32 %v97_v30, 0.0 }
  0xc1   :  { %v108_v36 = vmul.f32 %v99_v34, %v99_v34  ;;  %v111_v37 = vadd.f32 %v109_v32, %v103_v35 }
  0xc3   :  { %v110_v39 = vmul.f32 %v108_v36, %v106_v33  ;;  %v125_v41 = vsel %vm124_vm6, %v111_v37, 0.0 }
  0xc5   :  { %v112_v40 = vadd.f32 %v110_v39, %v104_v38 }
  0xc7   :  { %v126_v42 = vsel %vm124_vm6, %v112_v40, 0.0 }
  0xc8   :  { %v127_v43 = vadd.f32 %v126_v42, %v125_v41 }
  0xca   :  { %v128_v44 = vrot.slane %v127_v43, 4 }
  0xcc   :  { %v129_v45 = vadd.f32 %v128_v44, %v127_v43 }
  0xce   :  { %v130_v46 = vrot.slane %v129_v45, 2 }
  0xd0   :  { %v131_v47 = vadd.f32 %v130_v46, %v129_v45 }
  0xd2   :  { %v132_v48 = vrot.slane %v131_v47, 1 }
  0xd4   :  { %v133_v50 = vadd.f32 %v132_v48, %v131_v47 }
  0xd6   :  { %v134_v51 = vadd.f32 %v133_v50, %v123_v49 }
  0xd8   :  { %136 = vst.msk [vmem:[#allocation2] sm:$0x1] %vm61_vm1, %v134_v51 }
  0xdf   :  { %v140_v52 = vld [vmem:[#allocation2] sm:$0x1] }
  0xe0   :  { %141 = vst.msk [vmem:[#allocation6] sm:$0x1] %vm61_vm1, %v140_v52 }
  0xe1   :  { %205 = shalt.err (!%p202_p12)
}
  0xe2   :  { %s206_s10 = scalar_lea.hbm %s287_s3, 16 }
  0xe3   :  { %p207_p13 = scmp.ne.s32.totalorder %s287_s3, %s206_s10  ;;  %p210_p0 = scmp.lt.u32.totalorder %s206_s10, %s287_s3 }
  0xe5   :  { %p212_p1 = pnand %p210_p0, %p207_p13 }
  0xe7   :  { %215 = shalt.err (!%p212_p1)
}
  0xe8   :  { %151 = dma.vmem_to_hbm [thread:$0]  %s149_s5, 16, %s287_s3, [#allocation5]  }
  0xe9   :  { %218 = dma.done.wait [#allocation5], 16  }
  0xea   :  { %219 = vsyncadd [#allocation5], 4294967280 }
  0xeb   :  { %155 = vsyncpa [#allocation4], 1 }
  0xec   :  { %156 = vsyncpa [#allocation5], 1 }

</bundles_post_ra>
